<compile_context>
chip_gen: v5e
topology: v5e:2x2
jax: 0.10.0
libtpu: 0.0.40
codegen_flags: <defaults>
</compile_context>

<pallas_src>
import functools

import jax
import jax.numpy as jnp
from jax.experimental import pallas as pl
from jax.experimental.pallas import tpu as pltpu


def _ls_ce_kernel(x_ref, tgt_ref, out_ref, *, confidence, smooth_val, n, tn):
    # x_ref: (TN, C) input dtype, tgt_ref: (TN, 1) int32, out_ref: (1, 1, 128) f32
    pid = pl.program_id(0)

    x = x_ref[...]                                           # (TN, C) native dtype
    tgt = tgt_ref[...]                                       # (TN, 1) int32
    c = x.shape[-1]

    # Numerically stable pieces; max/subtract stay in the input dtype
    # (bf16-friendly), only `shifted` is upcast for exp / reductions.
    m = jnp.max(x, axis=-1, keepdims=True)                   # (TN, 1)
    shifted = (x - m).astype(jnp.float32)                    # (TN, C) f32, <= 0
    lse = jnp.log(jnp.sum(jnp.exp(shifted), axis=-1, keepdims=True))  # (TN, 1)

    # Fused weighted reduction: sum_c(true_dist * shifted) in a single pass.
    # (1, C) iota broadcast against (TN, 1) targets -> no (TN, C) int32 temp.
    col = jax.lax.broadcasted_iota(jnp.int32, (1, c), 1)     # (1, C)
    w = jnp.where(col == tgt, jnp.float32(confidence), jnp.float32(smooth_val))
    wsum = jnp.sum(w * shifted, axis=-1, keepdims=True)      # (TN, 1)

    # per-row smoothed CE (uses sum(true_dist) == 1):  lse - sum(true_dist*shifted)
    per_row = lse - wsum                                     # (TN, 1)

    # Mask rows that fall past the real batch (ragged last tile — we never pad
    # in HBM; the OOB tail of the block may hold garbage and is neutralized here).
    row = pid * tn + jax.lax.broadcasted_iota(jnp.int32, (tn, 1), 0)
    per_row = jnp.where(row < n, per_row, 0.0)

    partial = jnp.sum(per_row)                               # scalar f32
    out_ref[...] = jnp.full((1, 1, 128), partial, dtype=jnp.float32)


def label_smoothing_cross_entropy(x, target, smoothing=0.1, tile_rows=None):
    n, c = x.shape
    confidence = 1.0 - smoothing
    smooth_val = smoothing / (c - 1)  # matches torch: smoothing / (x.size(1) - 1)

    # --- choose the row-tile size (multiple of 8, dtype/VMEM-budget aware) ---
    if tile_rows is None:
        itemsize = x.dtype.itemsize
        # Per-row working set: double-buffered input tile + ~3 f32 (TN, C)
        # temporaries (shifted / exp / weights) kept by the compiler.
        bytes_per_row = 2 * c * itemsize + 12 * c
        budget_bytes = 20 * 1024 * 1024          # safe inside v7x's 64 MiB/TC
        tn = max(8, (budget_bytes // bytes_per_row) // 8 * 8)
    else:
        tn = max(8, (tile_rows // 8) * 8)
    # Don't exceed the (rounded-up) batch.
    tn = min(tn, max(8, ((n + 7) // 8) * 8))
    # Prefer >= 2 grid steps so the "parallel" row axis can shard across both
    # v7x TensorCores (no-op when the budget already forces multiple tiles).
    if tile_rows is None and n > 8:
        tn = min(tn, max(8, ((pl.cdiv(n, 2) + 7) // 8) * 8))

    num_tiles = pl.cdiv(n, tn)
    tgt2d = target.astype(jnp.int32).reshape(n, 1)

    kernel = functools.partial(
        _ls_ce_kernel,
        confidence=confidence,
        smooth_val=smooth_val,
        n=n,
        tn=tn,
    )

    partials = pl.pallas_call(
        kernel,
        out_shape=jax.ShapeDtypeStruct((num_tiles, 1, 128), jnp.float32),
        grid=(num_tiles,),
        in_specs=[
            pl.BlockSpec((tn, c), lambda i: (i, 0)),
            pl.BlockSpec((tn, 1), lambda i: (i, 0)),
        ],
        out_specs=pl.BlockSpec((1, 1, 128), lambda i: (i, 0, 0)),
        compiler_params=pltpu.CompilerParams(
            dimension_semantics=("parallel",),
            vmem_limit_bytes=32 * 1024 * 1024,
        ),
    )(x, tgt2d)

    # Tiny final reduction + mean in plain JAX.
    return jnp.sum(partials[:, 0, 0]) / jnp.float32(n)


def _reference(x, target, smoothing=0.1):
    # pure-JAX reference of the torch forward
    n, c = x.shape
    logp = jax.nn.log_softmax(x.astype(jnp.float32), axis=-1)
    true_dist = jnp.full((n, c), smoothing / (c - 1), dtype=jnp.float32)
    true_dist = true_dist.at[jnp.arange(n), target].set(1.0 - smoothing)
    return jnp.mean(jnp.sum(-true_dist * logp, axis=-1))


if __name__ == "__main__":
    key = jax.random.PRNGKey(0)
    k1, k2, k3, k4, k5, k6 = jax.random.split(key, 6)

    # Case 1: small, single tile (batch=8 rows of logits over 32 classes).
    N1, C1 = 8, 32
    x1 = jax.random.normal(k1, (N1, C1), dtype=jnp.float32)
    t1 = jax.random.randint(k2, (N1,), 0, C1, dtype=jnp.int32)
    loss1 = label_smoothing_cross_entropy(x1, t1, smoothing=0.1)
    jax.block_until_ready(loss1)
    ref1 = _reference(x1, t1, smoothing=0.1)
    assert jnp.allclose(loss1, ref1, atol=1e-5, rtol=1e-5), (loss1, ref1)

    # Case 2: multi-tile grid with an unpadded ragged tail (N=20, tile=8).
    N2, C2 = 20, 160
    x2 = jax.random.normal(k3, (N2, C2), dtype=jnp.float32)
    t2 = jax.random.randint(k4, (N2,), 0, C2, dtype=jnp.int32)
    loss2 = label_smoothing_cross_entropy(x2, t2, smoothing=0.1, tile_rows=8)
    jax.block_until_ready(loss2)
    ref2 = _reference(x2, t2, smoothing=0.1)
    assert jnp.allclose(loss2, ref2, atol=1e-5, rtol=1e-5), (loss2, ref2)

    # Case 3: bf16 input exercising the dtype-preserving pre-softmax path and
    # the auto tile heuristic (2 tiles).
    N3, C3 = 24, 256
    x3 = jax.random.normal(k5, (N3, C3), dtype=jnp.float32).astype(jnp.bfloat16)
    t3 = jax.random.randint(k6, (N3,), 0, C3, dtype=jnp.int32)
    loss3 = label_smoothing_cross_entropy(x3, t3, smoothing=0.1)
    jax.block_until_ready(loss3)
    ref3 = _reference(x3, t3, smoothing=0.1)
    assert jnp.allclose(loss3, ref3, atol=3e-2, rtol=3e-2), (loss3, ref3)

    print("KERNEL_OK")
</pallas_src>

<mosaic_0001>
module attributes {stable_mosaic.version = 11 : i64} {
  func.func @_ls_ce_kernel(%arg0: i32, %arg1: memref<8x32xf32, #tpu.memory_space<vmem>>, %arg2: memref<8x1xi32, #tpu.memory_space<vmem>>, %arg3: memref<1x1x128xf32, #tpu.memory_space<vmem>>) attributes {dimension_semantics = [#tpu.dimension_semantics<parallel>], iteration_bounds = array<i64: 1>, scalar_prefetch = 0 : i64, scratch_operands = 0 : i64, tpu.core_type = #tpu.core_type<tc>, window_params = [{transform_indices = @transform_0, window_bounds = array<i64: 8, 32>}, {transform_indices = @transform_1, window_bounds = array<i64: 8, 1>}, {transform_indices = @transform_2, window_bounds = array<i64: 1, 1, 128>}]} {
    %c0 = arith.constant 0 : index
    %c0_0 = arith.constant 0 : index
    %0 = vector.load %arg1[%c0, %c0_0] : memref<8x32xf32, #tpu.memory_space<vmem>>, vector<8x32xf32>
    %c0_1 = arith.constant 0 : index
    %c0_2 = arith.constant 0 : index
    %1 = vector.load %arg2[%c0_1, %c0_2] : memref<8x1xi32, #tpu.memory_space<vmem>>, vector<8x1xi32>
    %cst = arith.constant dense<0xFF800000> : vector<8xf32>
    %2 = vector.multi_reduction <maximumf>, %0, %cst [1] : vector<8x32xf32> to vector<8xf32>
    %3 = vector.shape_cast %2 : vector<8xf32> to vector<8x1xf32>
    %4 = vector.broadcast %3 : vector<8x1xf32> to vector<8x32xf32>
    %5 = arith.subf %0, %4 : vector<8x32xf32>
    %6 = math.exp %5 : vector<8x32xf32>
    %cst_3 = arith.constant dense<0.000000e+00> : vector<8xf32>
    %7 = vector.multi_reduction <add>, %6, %cst_3 [1] : vector<8x32xf32> to vector<8xf32>
    %8 = vector.shape_cast %7 : vector<8xf32> to vector<8x1xf32>
    %9 = math.log %8 : vector<8x1xf32>
    %10 = tpu.iota {dimensions = array<i32: 1>} : vector<1x32xi32>
    %11 = vector.broadcast %10 : vector<1x32xi32> to vector<8x32xi32>
    %12 = vector.broadcast %1 : vector<8x1xi32> to vector<8x32xi32>
    %13 = arith.cmpi eq, %11, %12 : vector<8x32xi32>
    %cst_4 = arith.constant 0.899999976 : f32
    %cst_5 = arith.constant 0.0032258064 : f32
    %14 = vector.broadcast %cst_4 : f32 to vector<8x32xf32>
    %15 = vector.broadcast %cst_5 : f32 to vector<8x32xf32>
    %16 = arith.select %13, %14, %15 : vector<8x32xi1>, vector<8x32xf32>
    %17 = arith.mulf %16, %5 : vector<8x32xf32>
    %cst_6 = arith.constant dense<0.000000e+00> : vector<8xf32>
    %18 = vector.multi_reduction <add>, %17, %cst_6 [1] : vector<8x32xf32> to vector<8xf32>
    %19 = vector.shape_cast %18 : vector<8xf32> to vector<8x1xf32>
    %20 = arith.subf %9, %19 : vector<8x1xf32>
    %c8_i32 = arith.constant 8 : i32
    %21 = arith.muli %arg0, %c8_i32 : i32
    %22 = tpu.iota {dimensions = array<i32: 0>} : vector<8x1xi32>
    %23 = vector.broadcast %21 : i32 to vector<8x1xi32>
    %24 = arith.addi %23, %22 : vector<8x1xi32>
    %c8_i32_7 = arith.constant 8 : i32
    %25 = vector.broadcast %c8_i32_7 : i32 to vector<8x1xi32>
    %26 = arith.cmpi slt, %24, %25 : vector<8x1xi32>
    %cst_8 = arith.constant 0.000000e+00 : f32
    %27 = vector.broadcast %cst_8 : f32 to vector<8x1xf32>
    %28 = arith.select %26, %20, %27 : vector<8x1xi1>, vector<8x1xf32>
    %29 = vector.shape_cast %28 : vector<8x1xf32> to vector<1x8x1xf32>
    %cst_9 = arith.constant dense<0.000000e+00> : vector<1xf32>
    %30 = vector.multi_reduction <add>, %29, %cst_9 [1, 2] : vector<1x8x1xf32> to vector<1xf32>
    %31 = vector.shape_cast %30 : vector<1xf32> to vector<1x1x1xf32>
    %32 = vector.extract %31[0, 0, 0] : f32 from vector<1x1x1xf32>
    %33 = vector.broadcast %32 : f32 to vector<1x1x128xf32>
    %c0_10 = arith.constant 0 : index
    %c0_11 = arith.constant 0 : index
    %c0_12 = arith.constant 0 : index
    %34 = vector.load %arg3[%c0_10, %c0_11, %c0_12] : memref<1x1x128xf32, #tpu.memory_space<vmem>>, vector<1x1x128xf32>
    tpu.vector_store %arg3[%c0_10, %c0_11, %c0_12], %33 {strides = array<i32>} : memref<1x1x128xf32, #tpu.memory_space<vmem>>, vector<1x1x128xf32>,
    return
  }
  func.func @transform_0(%arg0: i32) -> (i32, i32) {
    %c0_i32 = arith.constant 0 : i32
    %c0_i32_0 = arith.constant 0 : i32
    return %arg0, %c0_i32 : i32, i32
  }
  func.func @transform_1(%arg0: i32) -> (i32, i32) {
    %c0_i32 = arith.constant 0 : i32
    %c0_i32_0 = arith.constant 0 : i32
    return %arg0, %c0_i32 : i32, i32
  }
  func.func @transform_2(%arg0: i32) -> (i32, i32, i32) {
    %c0_i32 = arith.constant 0 : i32
    %c0_i32_0 = arith.constant 0 : i32
    %c0_i32_1 = arith.constant 0 : i32
    return %arg0, %c0_i32, %c0_i32_0 : i32, i32, i32
  }
}

</mosaic_0001>

<bundles_post_ra>
// kernel: tpu_custom_call.1
= control target key start
LH: loop header
LB: loop body
LE: loop exit
PB: predicated region body
PF: predicated region fallthrough
CT: control target
= control target key end

     0   :  { %vm14_vm0 = vcmask 261120   ;;  %s140_s0 = inlined_call_operand.vmem [shape: f32[8,32], index: 0, kind: input, shape index: {}]   ;;  %s141_s1 = inlined_call_operand.vmem [shape: s32[8,1], index: 1, kind: input, shape index: {}]   ;;  %s142_s2 = inlined_call_operand.hbm [shape: f32[1,1,128], index: 2, kind: output, shape index: {}]  }
   0x1   :  { %v12_v0 = vld [vmem:[%s140_s0] sm:$0xff] }
   0x2   :  { %7 = vsyncpa [#allocation3], 0  ;;  %v15_v1 = vsel %vm14_vm0, %v12_v0, -inf  ;;  %v110_v2 = vmov 0   ;;  %v13_v3 = vld [vmem:[%s141_s1] sm:$0xff]  ;;  %v26_v9 = vlaneseq  ;;  %vm45_vm2 = vcmask 7168  }
   0x3   :  { %79 = vset.pattern.permute.xlu0 %v110_v2  ;;  %v111_v12 = vmov 0.0032258064   ;;  %s112_s0 = smov [#allocation2]   ;;  %s65_s15 = sshll.u32 %s142_s2, 4  ;;  %s66_s15 = int_to_ptr.hbm [resolvable:$true] %s65_s15 }
   0x4   :  { %16 = vmax.xlane.f32.xlu0 %v15_v1  ;;  %v27_v10 = vand.u32 127, %v26_v9  ;;  %s63_s1 = sshll.u32 %s112_s0, 4  ;;  %s64_s1 = int_to_ptr.vmem [resolvable:$true] %s63_s1 }
  0x18   :  { %29 = vperm.xlu0 %79, %v13_v3  }
  0x77   :  { %v17_v4 = vpop.xlane.xlu0 %16 }
  0x78   :  { %v18_v5 = vsub.f32 %v12_v0, %v17_v4 }
  0x7a   :  { %v19_v6 = vmul.f32 1.442695, %v18_v5 }
  0x7c   :  { %80 = vpow2.f32 %v19_v6 }
  0x82   :  { %v81_v7 = vpop.eup %80 }
  0x83   :  { %v21_v8 = vsel %vm14_vm0, %v81_v7, 0.0 }
  0x84   :  { %22 = vadd.xlane.f32.xlu1 %v21_v8 }
  0x8a   :  { %v30_v11 = vpop.permute.xlu0 %29 }
  0x8b   :  { %vm31_vm1 = vcmp.eq.s32.totalorder %v27_v10, %v30_v11 }
  0x8c   :  { %v32_v13 = vsel %vm31_vm1, 0.9, %v111_v12 }
  0x8d   :  { %v33_v14 = vmul.f32 %v32_v13, %v18_v5 }
  0x8f   :  { %v34_v15 = vsel %vm14_vm0, %v33_v14, 0.0 }
  0x90   :  { %35 = vadd.xlane.f32.xlu1 %v34_v15 }
  0xf7   :  { %v23_v16 = vpop.xlane.xlu1 %22 }
  0xf8   :  { %82 = vlog2.f32 %v23_v16 }
  0xfe   :  { %v83_v17 = vpop.eup %82 }
  0xff   :  { %v25_v18 = vmul.f32 0.6931472, %v83_v17 }
 0x103   :  { %v36_v19 = vpop.xlane.xlu1 %35 }
 0x104   :  { %v37_v20 = vsub.f32 %v25_v18, %v36_v19 }
 0x106   :  { %v46_v21 = vsel %vm45_vm2, %v37_v20, 0.0 }
 0x107   :  { %47 = vadd.xlane.f32.xlu2 %v46_v21 }
 0x17a   :  { %v48_v22 = vpop.xlane.xlu2 %47 }
 0x17b   :  { %v49_v23 = vrot.slane %v48_v22, 4 }
 0x17d   :  { %v50_v24 = vadd.f32 %v49_v23, %v48_v22 }
 0x17f   :  { %v51_v25 = vrot.slane %v50_v24, 2 }
 0x181   :  { %v52_v26 = vadd.f32 %v51_v25, %v50_v24 }
 0x183   :  { %v53_v27 = vrot.slane %v52_v26, 1 }
 0x185   :  { %v54_v28 = vadd.f32 %v53_v27, %v52_v26 }
 0x187   :  { %74 = vpush %v54_v28 }
 0x1b8   :  { %s75_s16 = spop %74 }
 0x1b9   :  { %v56_v29 = vstv %s75_s16 }
 0x1ba   :  { %57 = vst [vmem:[#allocation2] sm:$0x1] %v56_v29 }
 0x1bb   :  { %68 = dma.vmem_to_hbm [thread:$0]  %s64_s1, 16, %s66_s15, [#allocation3]  }
 0x1bc   :  { %108 = dma.done.wait [#allocation3], 16  }
 0x1bd   :  { %109 = vsyncadd [#allocation3], 4294967280 }
 0x1be   :  { %73 = vsyncpa [#allocation3], 1 }

</bundles_post_ra>
